<compile_context>
chip_gen: v5e
topology: v5e:2x2
jax: 0.10.0
libtpu: 0.0.40
codegen_flags: <defaults>
</compile_context>

<pallas_src>
import jax
import jax.numpy as jnp
from jax.experimental import pallas as pl
from jax.experimental.pallas import tpu as pltpu

H1 = 128       # hidden dim of linear1 (already lane aligned)
H2_RAW = 64    # true hidden dim of linear2
H2 = 128       # linear2 hidden dim zero-padded 64 -> 128 for lane-dense matmuls
LANE = 128
SUBLANE = 8


def _round_up(x, m):
    return ((x + m - 1) // m) * m


def simplenet_kernel(x_ref, w1_ref, b1_ref, w2_ref, b2_ref, w3_ref, b3_ref, o_ref):
    x = x_ref[...]
    # Layer 1: Linear(in_dims, 128) + ReLU
    h1 = jnp.maximum(
        jnp.dot(x, w1_ref[...], preferred_element_type=jnp.float32) + b1_ref[...], 0.0)
    # Layer 2: Linear(128, 64 -> padded 128) + ReLU
    h2 = jnp.maximum(
        jnp.dot(h1, w2_ref[...], preferred_element_type=jnp.float32) + b2_ref[...], 0.0)
    # Layer 3: Linear(64 -> padded 128, out_dims -> padded) + ReLU
    h3 = jnp.maximum(
        jnp.dot(h2, w3_ref[...], preferred_element_type=jnp.float32) + b3_ref[...], 0.0)
    # F.normalize(p=2, dim=1): x / max(||x||, 1e-12) == x * rsqrt(max(||x||^2, 1e-24)).
    # Padded columns of h3 are exactly zero, so the row norm is unchanged.
    sq = jnp.sum(h3 * h3, axis=1, keepdims=True)
    inv = jax.lax.rsqrt(jnp.maximum(sq, 1e-24))
    o_ref[...] = (h3 * inv).astype(o_ref.dtype)


def _pad_params(params, din_pad, dout_pad):
    """Zero-pad weights/biases so every matmul dim is a multiple of 128.

    Zero rows of W1 kill the padded x columns; zero columns of W2/W3 plus zero
    bias give relu(0)=0 activations in the padded slots, which contribute
    nothing downstream or to the L2 norm.
    """
    w1, b1, w2, b2, w3, b3 = params
    din = w1.shape[0]
    dout = w3.shape[1]
    w1p = jnp.pad(w1, ((0, din_pad - din), (0, 0)))              # (din_pad, 128)
    w2p = jnp.pad(w2, ((0, 0), (0, H2 - H2_RAW)))                # (128, 128)
    b2p = jnp.pad(b2, ((0, 0), (0, H2 - H2_RAW)))                # (1, 128)
    w3p = jnp.pad(w3, ((0, H2 - H2_RAW), (0, dout_pad - dout)))  # (128, dout_pad)
    b3p = jnp.pad(b3, ((0, 0), (0, dout_pad - dout)))            # (1, dout_pad)
    return w1p, b1, w2p, b2p, w3p, b3p


def simplenet_forward(input1, input2, params, *, max_tb=256):
    """Fused SimpleNet.forward: one pallas_call over the concatenated batch."""
    w1, b1, w2, b2, w3, b3 = params
    din = w1.shape[0]
    dout = w3.shape[1]

    n1 = input1.shape[0]
    n2 = input2.shape[0]
    btot = n1 + n2

    # Lane-dense feature dims.
    din_pad = _round_up(din, LANE)
    dout_pad = _round_up(dout, LANE)

    # Batch tile: whole (sublane-rounded) batch if small, else 256-row tiles.
    tb = min(max_tb, _round_up(btot, SUBLANE))
    bp = _round_up(btot, tb)

    x = jnp.concatenate([input1, input2], axis=0).astype(jnp.float32)
    x = jnp.pad(x, ((0, bp - btot), (0, din_pad - din)))

    w1p, b1p, w2p, b2p, w3p, b3p = _pad_params(params, din_pad, dout_pad)

    grid = (bp // tb,)
    out = pl.pallas_call(
        simplenet_kernel,
        out_shape=jax.ShapeDtypeStruct((bp, dout_pad), jnp.float32),
        grid_spec=pltpu.PrefetchScalarGridSpec(
            num_scalar_prefetch=0,
            grid=grid,
            in_specs=[
                pl.BlockSpec((tb, din_pad), lambda i: (i, 0)),   # x tile over batch
                pl.BlockSpec((din_pad, H1), lambda i: (0, 0)),   # W1 (resident: constant block)
                pl.BlockSpec((1, H1), lambda i: (0, 0)),         # b1
                pl.BlockSpec((H1, H2), lambda i: (0, 0)),        # W2
                pl.BlockSpec((1, H2), lambda i: (0, 0)),         # b2
                pl.BlockSpec((H2, dout_pad), lambda i: (0, 0)),  # W3
                pl.BlockSpec((1, dout_pad), lambda i: (0, 0)),   # b3
            ],
            out_specs=pl.BlockSpec((tb, dout_pad), lambda i: (i, 0)),
        ),
        compiler_params=pltpu.CompilerParams(
            dimension_semantics=("parallel",)),
    )(x, w1p, b1p, w2p, b2p, w3p, b3p)

    out = out[:btot, :dout]
    return out[:n1], out[n1:]


def init_params(key, in_dims, out_dims):
    """Deterministic init mimicking nn.Linear's U(-1/sqrt(fan_in), 1/sqrt(fan_in))."""
    dims = [(in_dims, H1), (H1, H2_RAW), (H2_RAW, out_dims)]
    params = []
    for i, (fan_in, fan_out) in enumerate(dims):
        kw, kb = jax.random.split(jax.random.fold_in(key, i))
        bound = 1.0 / jnp.sqrt(jnp.float32(fan_in))
        w = jax.random.uniform(kw, (fan_in, fan_out), jnp.float32, -bound, bound)
        b = jax.random.uniform(kb, (1, fan_out), jnp.float32, -bound, bound)
        params += [w, b]
    return tuple(params)


def reference_forward_once(x, params):
    w1, b1, w2, b2, w3, b3 = params
    h = jnp.maximum(x @ w1 + b1, 0.0)
    h = jnp.maximum(h @ w2 + b2, 0.0)
    h = jnp.maximum(h @ w3 + b3, 0.0)
    denom = jnp.maximum(jnp.sqrt(jnp.sum(h * h, axis=1, keepdims=True)), 1e-12)
    return h / denom


if __name__ == "__main__":
    key = jax.random.PRNGKey(0)
    k_params, k_x1, k_x2 = jax.random.split(key, 3)

    in_dims, out_dims = 32, 32
    batch = 16

    params = init_params(k_params, in_dims, out_dims)
    input1 = jax.random.normal(k_x1, (batch, in_dims), jnp.float32)
    input2 = jax.random.normal(k_x2, (batch, in_dims), jnp.float32)

    fwd = jax.jit(simplenet_forward)
    out1, out2 = fwd(input1, input2, params)
    out1 = jax.block_until_ready(out1)
    out2 = jax.block_until_ready(out2)

    # Correctness check against a pure-JAX reference of the PyTorch semantics.
    ref1 = reference_forward_once(input1, params)
    ref2 = reference_forward_once(input2, params)
    assert out1.shape == (batch, out_dims) and out2.shape == (batch, out_dims)
    assert jnp.allclose(out1, ref1, atol=1e-5, rtol=1e-5)
    assert jnp.allclose(out2, ref2, atol=1e-5, rtol=1e-5)

    print("KERNEL_OK")
</pallas_src>

<mosaic_0001>
module attributes {stable_mosaic.version = 11 : i64} {
  func.func @simplenet_kernel(%arg0: i32, %arg1: memref<32x128xf32, #tpu.memory_space<vmem>>, %arg2: memref<128x128xf32, #tpu.memory_space<vmem>>, %arg3: memref<1x128xf32, #tpu.memory_space<vmem>>, %arg4: memref<128x128xf32, #tpu.memory_space<vmem>>, %arg5: memref<1x128xf32, #tpu.memory_space<vmem>>, %arg6: memref<128x128xf32, #tpu.memory_space<vmem>>, %arg7: memref<1x128xf32, #tpu.memory_space<vmem>>, %arg8: memref<32x128xf32, #tpu.memory_space<vmem>>) attributes {dimension_semantics = [#tpu.dimension_semantics<parallel>], iteration_bounds = array<i64: 1>, scalar_prefetch = 0 : i64, scratch_operands = 0 : i64, tpu.core_type = #tpu.core_type<tc>, window_params = [{transform_indices = @transform_0, window_bounds = array<i64: 32, 128>}, {pipeline_mode = #tpu.pipeline_mode<synchronous>, transform_indices = @transform_1, window_bounds = array<i64: 128, 128>}, {pipeline_mode = #tpu.pipeline_mode<synchronous>, transform_indices = @transform_2, window_bounds = array<i64: 1, 128>}, {pipeline_mode = #tpu.pipeline_mode<synchronous>, transform_indices = @transform_3, window_bounds = array<i64: 128, 128>}, {pipeline_mode = #tpu.pipeline_mode<synchronous>, transform_indices = @transform_4, window_bounds = array<i64: 1, 128>}, {pipeline_mode = #tpu.pipeline_mode<synchronous>, transform_indices = @transform_5, window_bounds = array<i64: 128, 128>}, {pipeline_mode = #tpu.pipeline_mode<synchronous>, transform_indices = @transform_6, window_bounds = array<i64: 1, 128>}, {transform_indices = @transform_7, window_bounds = array<i64: 32, 128>}]} {
    %c0 = arith.constant 0 : index
    %c0_0 = arith.constant 0 : index
    %0 = vector.load %arg1[%c0, %c0_0] : memref<32x128xf32, #tpu.memory_space<vmem>>, vector<32x128xf32>
    %c0_1 = arith.constant 0 : index
    %c0_2 = arith.constant 0 : index
    %1 = vector.load %arg2[%c0_1, %c0_2] : memref<128x128xf32, #tpu.memory_space<vmem>>, vector<128x128xf32>
    %cst = arith.constant dense<0.000000e+00> : vector<32x128xf32>
    %2 = tpu.matmul %0, %1, %cst {dimension_numbers = #tpu.dot_dimension_numbers<[1], [0], [0], [1], [0, 0, 1, 1], [], []>} : vector<32x128xf32>, vector<128x128xf32>, vector<32x128xf32> -> vector<32x128xf32>
    %c0_3 = arith.constant 0 : index
    %c0_4 = arith.constant 0 : index
    %3 = vector.load %arg3[%c0_3, %c0_4] : memref<1x128xf32, #tpu.memory_space<vmem>>, vector<1x128xf32>
    %4 = vector.broadcast %3 : vector<1x128xf32> to vector<32x128xf32>
    %5 = arith.addf %2, %4 : vector<32x128xf32>
    %cst_5 = arith.constant 0.000000e+00 : f32
    %6 = vector.broadcast %cst_5 : f32 to vector<32x128xf32>
    %7 = arith.maximumf %5, %6 : vector<32x128xf32>
    %c0_6 = arith.constant 0 : index
    %c0_7 = arith.constant 0 : index
    %8 = vector.load %arg4[%c0_6, %c0_7] : memref<128x128xf32, #tpu.memory_space<vmem>>, vector<128x128xf32>
    %cst_8 = arith.constant dense<0.000000e+00> : vector<32x128xf32>
    %9 = tpu.matmul %7, %8, %cst_8 {dimension_numbers = #tpu.dot_dimension_numbers<[1], [0], [0], [1], [0, 0, 1, 1], [], []>} : vector<32x128xf32>, vector<128x128xf32>, vector<32x128xf32> -> vector<32x128xf32>
    %c0_9 = arith.constant 0 : index
    %c0_10 = arith.constant 0 : index
    %10 = vector.load %arg5[%c0_9, %c0_10] : memref<1x128xf32, #tpu.memory_space<vmem>>, vector<1x128xf32>
    %11 = vector.broadcast %10 : vector<1x128xf32> to vector<32x128xf32>
    %12 = arith.addf %9, %11 : vector<32x128xf32>
    %cst_11 = arith.constant 0.000000e+00 : f32
    %13 = vector.broadcast %cst_11 : f32 to vector<32x128xf32>
    %14 = arith.maximumf %12, %13 : vector<32x128xf32>
    %c0_12 = arith.constant 0 : index
    %c0_13 = arith.constant 0 : index
    %15 = vector.load %arg6[%c0_12, %c0_13] : memref<128x128xf32, #tpu.memory_space<vmem>>, vector<128x128xf32>
    %cst_14 = arith.constant dense<0.000000e+00> : vector<32x128xf32>
    %16 = tpu.matmul %14, %15, %cst_14 {dimension_numbers = #tpu.dot_dimension_numbers<[1], [0], [0], [1], [0, 0, 1, 1], [], []>} : vector<32x128xf32>, vector<128x128xf32>, vector<32x128xf32> -> vector<32x128xf32>
    %c0_15 = arith.constant 0 : index
    %c0_16 = arith.constant 0 : index
    %17 = vector.load %arg7[%c0_15, %c0_16] : memref<1x128xf32, #tpu.memory_space<vmem>>, vector<1x128xf32>
    %18 = vector.broadcast %17 : vector<1x128xf32> to vector<32x128xf32>
    %19 = arith.addf %16, %18 : vector<32x128xf32>
    %cst_17 = arith.constant 0.000000e+00 : f32
    %20 = vector.broadcast %cst_17 : f32 to vector<32x128xf32>
    %21 = arith.maximumf %19, %20 : vector<32x128xf32>
    %22 = arith.mulf %21, %21 : vector<32x128xf32>
    %cst_18 = arith.constant dense<0.000000e+00> : vector<32xf32>
    %23 = vector.multi_reduction <add>, %22, %cst_18 [1] : vector<32x128xf32> to vector<32xf32>
    %24 = vector.shape_cast %23 : vector<32xf32> to vector<32x1xf32>
    %cst_19 = arith.constant 1.000000e-24 : f32
    %25 = vector.broadcast %cst_19 : f32 to vector<32x1xf32>
    %26 = arith.maximumf %24, %25 : vector<32x1xf32>
    %27 = math.rsqrt %26 : vector<32x1xf32>
    %28 = vector.broadcast %27 : vector<32x1xf32> to vector<32x128xf32>
    %29 = arith.mulf %21, %28 : vector<32x128xf32>
    %c0_20 = arith.constant 0 : index
    %c0_21 = arith.constant 0 : index
    %30 = vector.load %arg8[%c0_20, %c0_21] : memref<32x128xf32, #tpu.memory_space<vmem>>, vector<32x128xf32>
    tpu.vector_store %arg8[%c0_20, %c0_21], %29 {strides = array<i32>} : memref<32x128xf32, #tpu.memory_space<vmem>>, vector<32x128xf32>,
    return
  }
  func.func @transform_0(%arg0: i32) -> (i32, i32) {
    %c0_i32 = arith.constant 0 : i32
    %c0_i32_0 = arith.constant 0 : i32
    return %arg0, %c0_i32 : i32, i32
  }
  func.func @transform_1(%arg0: i32) -> (i32, i32) {
    %c0_i32 = arith.constant 0 : i32
    %c0_i32_0 = arith.constant 0 : i32
    %c0_i32_1 = arith.constant 0 : i32
    return %c0_i32, %c0_i32_0 : i32, i32
  }
  func.func @transform_2(%arg0: i32) -> (i32, i32) {
    %c0_i32 = arith.constant 0 : i32
    %c0_i32_0 = arith.constant 0 : i32
    %c0_i32_1 = arith.constant 0 : i32
    return %c0_i32, %c0_i32_0 : i32, i32
  }
  func.func @transform_3(%arg0: i32) -> (i32, i32) {
    %c0_i32 = arith.constant 0 : i32
    %c0_i32_0 = arith.constant 0 : i32
    %c0_i32_1 = arith.constant 0 : i32
    return %c0_i32, %c0_i32_0 : i32, i32
  }
  func.func @transform_4(%arg0: i32) -> (i32, i32) {
    %c0_i32 = arith.constant 0 : i32
    %c0_i32_0 = arith.constant 0 : i32
    %c0_i32_1 = arith.constant 0 : i32
    return %c0_i32, %c0_i32_0 : i32, i32
  }
  func.func @transform_5(%arg0: i32) -> (i32, i32) {
    %c0_i32 = arith.constant 0 : i32
    %c0_i32_0 = arith.constant 0 : i32
    %c0_i32_1 = arith.constant 0 : i32
    return %c0_i32, %c0_i32_0 : i32, i32
  }
  func.func @transform_6(%arg0: i32) -> (i32, i32) {
    %c0_i32 = arith.constant 0 : i32
    %c0_i32_0 = arith.constant 0 : i32
    %c0_i32_1 = arith.constant 0 : i32
    return %c0_i32, %c0_i32_0 : i32, i32
  }
  func.func @transform_7(%arg0: i32) -> (i32, i32) {
    %c0_i32 = arith.constant 0 : i32
    %c0_i32_0 = arith.constant 0 : i32
    return %arg0, %c0_i32 : i32, i32
  }
}

</mosaic_0001>

<bundles_post_ra>
// kernel: simplenet_forward.1
= control target key start
LH: loop header
LB: loop body
LE: loop exit
PB: predicated region body
PF: predicated region fallthrough
CT: control target
= control target key end

     0   :  { %s506_s1 = inlined_call_operand.vmem [shape: f32[128,128], index: 1, kind: input, shape index: {}]   ;;  %s507_s2 = inlined_call_operand.vmem [shape: f32[1,128], index: 2, kind: input, shape index: {}]   ;;  %s508_s3 = inlined_call_operand.vmem [shape: f32[128,128], index: 3, kind: input, shape index: {}]   ;;  %s509_s0 = inlined_call_operand.vmem [shape: f32[32,128], index: 0, kind: input, shape index: {}]   ;;  %s510_s4 = inlined_call_operand.vmem [shape: f32[1,128], index: 4, kind: input, shape index: {}]   ;;  %s511_s5 = inlined_call_operand.vmem [shape: f32[128,128], index: 5, kind: input, shape index: {}]   ;;  %s512_s6 = inlined_call_operand.vmem [shape: f32[1,128], index: 6, kind: input, shape index: {}]   ;;  %s513_s7 = inlined_call_operand.vmem [shape: f32[32,128], index: 7, kind: output, shape index: {}]  }
   0x1   :  { %v45_v0 = vld [vmem:[%s506_s1 + $0x78] sm:$0xff]  ;;  %v44_v1 = vld [vmem:[%s506_s1 + $0x70] sm:$0xff]  ;;  %v43_v2 = vld [vmem:[%s506_s1 + $0x68] sm:$0xff] }
   0x2   :  { %50 = vmatpush.msra.mxu0 %v45_v0  ;;  %257 = vmatpush.msra.mxu3 %v45_v0  ;;  %v42_v3 = vld [vmem:[%s506_s1 + $0x60] sm:$0xff]  ;;  %v41_v4 = vld [vmem:[%s506_s1 + $0x58] sm:$0xff]  ;;  %v40_v5 = vld [vmem:[%s506_s1 + $0x50] sm:$0xff] }
   0x3   :  { %v39_v6 = vld [vmem:[%s506_s1 + $0x48] sm:$0xff]  ;;  %v38_v7 = vld [vmem:[%s506_s1 + $0x40] sm:$0xff]  ;;  %v37_v8 = vld [vmem:[%s506_s1 + $0x38] sm:$0xff] }
   0x4   :  { %51 = vmatpush.msra.mxu0 %v44_v1  ;;  %258 = vmatpush.msra.mxu3 %v44_v1  ;;  %v36_v9 = vld [vmem:[%s506_s1 + $0x30] sm:$0xff]  ;;  %v98_v10 = vld [vmem:[%s508_s3 + $0x78] sm:$0xff]  ;;  %v35_v12 = vld [vmem:[%s506_s1 + $0x28] sm:$0xff] }
   0x5   :  { %v97_v11 = vld [vmem:[%s508_s3 + $0x70] sm:$0xff]  ;;  %103 = vmatpush.msra.mxu1 %v98_v10  ;;  %v96_v13 = vld [vmem:[%s508_s3 + $0x68] sm:$0xff]  ;;  %v34_v14 = vld [vmem:[%s506_s1 + $0x20] sm:$0xff] }
   0x6   :  { %52 = vmatpush.msra.mxu0 %v43_v2  ;;  %259 = vmatpush.msra.mxu3 %v43_v2  ;;  %v95_v15 = vld [vmem:[%s508_s3 + $0x60] sm:$0xff]  ;;  %v33_v16 = vld [vmem:[%s506_s1 + $0x18] sm:$0xff]  ;;  %v32_v18 = vld [vmem:[%s506_s1 + $0x10] sm:$0xff] }
   0x7   :  { %104 = vmatpush.msra.mxu1 %v97_v11  ;;  %v94_v17 = vld [vmem:[%s508_s3 + $0x58] sm:$0xff]  ;;  %v93_v19 = vld [vmem:[%s508_s3 + $0x50] sm:$0xff]  ;;  %v31_v20 = vld [vmem:[%s506_s1 + $0x8] sm:$0xff] }
   0x8   :  { %53 = vmatpush.msra.mxu0 %v42_v3  ;;  %260 = vmatpush.msra.mxu3 %v42_v3  ;;  %v92_v21 = vld [vmem:[%s508_s3 + $0x48] sm:$0xff]  ;;  %v30_v22 = vld [vmem:[%s506_s1] sm:$0xff]  ;;  %v90_v26 = vld [vmem:[%s508_s3 + $0x38] sm:$0xff] }
   0x9   :  { %105 = vmatpush.msra.mxu1 %v96_v13  ;;  %v26_v23 = vld [vmem:[%s509_s0] sm:$0xff]  ;;  %v27_v24 = vld [vmem:[%s509_s0 + $0x8] sm:$0xff]  ;;  %v89_v27 = vld [vmem:[%s508_s3 + $0x30] sm:$0xff] }
   0xa   :  { %54 = vmatpush.msra.mxu0 %v41_v4  ;;  %261 = vmatpush.msra.mxu3 %v41_v4  ;;  %v91_v25 = vld [vmem:[%s508_s3 + $0x40] sm:$0xff]  ;;  %v88_v28 = vld [vmem:[%s508_s3 + $0x28] sm:$0xff]  ;;  %v28_v29 = vld [vmem:[%s509_s0 + $0x10] sm:$0xff] }
   0xb   :  { %106 = vmatpush.msra.mxu1 %v95_v15  ;;  %v87_v30 = vld [vmem:[%s508_s3 + $0x20] sm:$0xff]  ;;  %v86_v31 = vld [vmem:[%s508_s3 + $0x18] sm:$0xff]  ;;  %v85_v33 = vld [vmem:[%s508_s3 + $0x10] sm:$0xff] }
   0xc   :  { %55 = vmatpush.msra.mxu0 %v40_v5  ;;  %262 = vmatpush.msra.mxu3 %v40_v5  ;;  %v29_v32 = vld [vmem:[%s509_s0 + $0x18] sm:$0xff]  ;;  %v84_v34 = vld [vmem:[%s508_s3 + $0x8] sm:$0xff]  ;;  %v83_v35 = vld [vmem:[%s508_s3] sm:$0xff] }
   0xd   :  { %107 = vmatpush.msra.mxu1 %v94_v17  ;;  %v273_v36 = vld [vmem:[%s507_s2] ss:$0 sm:$0xff]  ;;  %v151_v37 = vld [vmem:[%s511_s5 + $0x78] sm:$0xff]  ;;  %v150_v38 = vld [vmem:[%s511_s5 + $0x70] sm:$0xff] }
   0xe   :  { %56 = vmatpush.msra.mxu0 %v39_v6  ;;  %263 = vmatpush.msra.mxu3 %v39_v6  ;;  %v149_v39 = vld [vmem:[%s511_s5 + $0x68] sm:$0xff]  ;;  %v148_v42 = vld [vmem:[%s511_s5 + $0x60] sm:$0xff]  ;;  %v147_v44 = vld [vmem:[%s511_s5 + $0x58] sm:$0xff] }
   0xf   :  { %108 = vmatpush.msra.mxu1 %v93_v19  ;;  %156 = vmatpush.msra.mxu2 %v151_v37  ;;  %v146_v45 = vld [vmem:[%s511_s5 + $0x50] sm:$0xff]  ;;  %v145_v48 = vld [vmem:[%s511_s5 + $0x48] sm:$0xff]  ;;  %v144_v50 = vld [vmem:[%s511_s5 + $0x40] sm:$0xff] }
  0x10   :  { %57 = vmatpush.msra.mxu0 %v38_v7  ;;  %264 = vmatpush.msra.mxu3 %v38_v7  ;;  %v143_v51 = vld [vmem:[%s511_s5 + $0x38] sm:$0xff]  ;;  %v142_v52 = vld [vmem:[%s511_s5 + $0x30] sm:$0xff]  ;;  %v141_v55 = vld [vmem:[%s511_s5 + $0x28] sm:$0xff] }
  0x11   :  { %109 = vmatpush.msra.mxu1 %v92_v21  ;;  %157 = vmatpush.msra.mxu2 %v150_v38  ;;  %v140_v57 = vld [vmem:[%s511_s5 + $0x20] sm:$0xff]  ;;  %v139_v58 = vld [vmem:[%s511_s5 + $0x18] sm:$0xff]  ;;  %v138_v62 = vld [vmem:[%s511_s5 + $0x10] sm:$0xff] }
  0x12   :  { %58 = vmatpush.msra.mxu0 %v37_v8  ;;  %265 = vmatpush.msra.mxu3 %v37_v8  ;;  %v137_v63 = vld [vmem:[%s511_s5 + $0x8] sm:$0xff]  ;;  %v136_v0 = vld [vmem:[%s511_s5] sm:$0xff] }
  0x13   :  { %110 = vmatpush.msra.mxu1 %v91_v25  ;;  %158 = vmatpush.msra.mxu2 %v149_v39  ;;  %v274_v1 = vld [vmem:[%s510_s4] ss:$0 sm:$0xff] }
  0x14   :  { %59 = vmatpush.msra.mxu0 %v36_v9  ;;  %266 = vmatpush.msra.mxu3 %v36_v9 }
  0x15   :  { %111 = vmatpush.msra.mxu1 %v90_v26  ;;  %159 = vmatpush.msra.mxu2 %v148_v42 }
  0x16   :  { %60 = vmatpush.msra.mxu0 %v35_v12  ;;  %267 = vmatpush.msra.mxu3 %v35_v12 }
  0x17   :  { %112 = vmatpush.msra.mxu1 %v89_v27  ;;  %160 = vmatpush.msra.mxu2 %v147_v44 }
  0x18   :  { %61 = vmatpush.msra.mxu0 %v34_v14  ;;  %268 = vmatpush.msra.mxu3 %v34_v14  ;;  %v275_v14 = vld [vmem:[%s512_s6] ss:$0 sm:$0xff] }
  0x19   :  { %113 = vmatpush.msra.mxu1 %v88_v28  ;;  %161 = vmatpush.msra.mxu2 %v146_v45 }
  0x1a   :  { %62 = vmatpush.msra.mxu0 %v33_v16  ;;  %269 = vmatpush.msra.mxu3 %v33_v16 }
  0x1b   :  { %114 = vmatpush.msra.mxu1 %v87_v30  ;;  %162 = vmatpush.msra.mxu2 %v145_v48 }
  0x1c   :  { %63 = vmatpush.msra.mxu0 %v32_v18  ;;  %270 = vmatpush.msra.mxu3 %v32_v18 }
  0x1d   :  { %115 = vmatpush.msra.mxu1 %v86_v31  ;;  %163 = vmatpush.msra.mxu2 %v144_v50 }
  0x1e   :  { %64 = vmatpush.msra.mxu0 %v31_v20  ;;  %271 = vmatpush.msra.mxu3 %v31_v20 }
  0x1f   :  { %116 = vmatpush.msra.mxu1 %v85_v33  ;;  %164 = vmatpush.msra.mxu2 %v143_v51 }
  0x20   :  { %65 = vmatpush.msra.mxu0 %v30_v22  ;;  %272 = vmatpush.msra.mxu3 %v30_v22 }
  0x21   :  { %66 = vmatmul.f32.vlgmr.msra.gmra.mxu0 %v26_v23  ;;  %69 = vmatmul.f32.vlgmr.msra.gmra.mxu3 %v27_v24 }
  0x22   :  { %117 = vmatpush.msra.mxu1 %v84_v34  ;;  %165 = vmatpush.msra.mxu2 %v142_v52 }
  0x24   :  { %118 = vmatpush.msra.mxu1 %v83_v35  ;;  %166 = vmatpush.msra.mxu2 %v141_v55 }
  0x26   :  { %167 = vmatpush.msra.mxu2 %v140_v57 }
  0x28   :  { %168 = vmatpush.msra.mxu2 %v139_v58 }
  0x29   :  { %72 = vmatmul.f32.gmra.mxu3 %v28_v29 }
  0x2a   :  { %169 = vmatpush.msra.mxu2 %v138_v62 }
  0x2c   :  { %170 = vmatpush.msra.mxu2 %v137_v63 }
  0x2e   :  { %171 = vmatpush.msra.mxu2 %v136_v0 }
  0x31   :  { %75 = vmatmul.f32.gmra.mxu3 %v29_v32 }
  0x9e   :  { %v67_v40 = vpop.f32.mrf.mxu0 }
  0x9f   :  { %v68_v41 = vadd.f32 %v273_v36, %v67_v40 }
  0xa1   :  { %v79_v43 = vmax.f32 %v68_v41, 0.0 }
  0xa3   :  { %119 = vmatmul.f32.vlgmr.msra.gmra.mxu1 %v79_v43 }
  0xa4   :  { %v70_v46 = vpop.f32.mrf.mxu3 }
  0xa5   :  { %v71_v47 = vadd.f32 %v273_v36, %v70_v46 }
  0xa7   :  { %v80_v49 = vmax.f32 %v71_v47, 0.0 }
  0xab   :  { %122 = vmatmul.f32.gmra.mxu1 %v80_v49 }
  0xac   :  { %v73_v53 = vpop.f32.mrf.mxu3 }
  0xad   :  { %v74_v54 = vadd.f32 %v273_v36, %v73_v53 }
  0xaf   :  { %v81_v56 = vmax.f32 %v74_v54, 0.0 }
  0xb3   :  { %125 = vmatmul.f32.gmra.mxu1 %v81_v56 }
  0xb4   :  { %v76_v59 = vpop.f32.mrf.mxu3 }
  0xb5   :  { %v77_v60 = vadd.f32 %v273_v36, %v76_v59 }
  0xb7   :  { %v82_v61 = vmax.f32 %v77_v60, 0.0 }
  0xbb   :  { %128 = vmatmul.f32.gmra.mxu1 %v82_v61 }
 0x120   :  { %v120_v2 = vpop.f32.mrf.mxu1 }
 0x121   :  { %v121_v3 = vadd.f32 %v274_v1, %v120_v2 }
 0x123   :  { %v132_v4 = vmax.f32 %v121_v3, 0.0 }
 0x125   :  { %172 = vmatmul.f32.vlgmr.msra.gmra.mxu2 %v132_v4 }
 0x128   :  { %v123_v5 = vpop.f32.mrf.mxu1 }
 0x129   :  { %v124_v6 = vadd.f32 %v274_v1, %v123_v5 }
 0x12b   :  { %v133_v7 = vmax.f32 %v124_v6, 0.0 }
 0x12d   :  { %175 = vmatmul.f32.gmra.mxu2 %v133_v7 }
 0x130   :  { %v126_v8 = vpop.f32.mrf.mxu1 }
 0x131   :  { %v127_v9 = vadd.f32 %v274_v1, %v126_v8 }
 0x133   :  { %v134_v10 = vmax.f32 %v127_v9, 0.0 }
 0x135   :  { %178 = vmatmul.f32.gmra.mxu2 %v134_v10 }
 0x138   :  { %v129_v11 = vpop.f32.mrf.mxu1 }
 0x139   :  { %v130_v12 = vadd.f32 %v274_v1, %v129_v11 }
 0x13b   :  { %v135_v13 = vmax.f32 %v130_v12, 0.0 }
 0x13d   :  { %181 = vmatmul.f32.gmra.mxu2 %v135_v13 }
 0x1a8   :  { %v173_v15 = vpop.f32.mrf.mxu2 }
 0x1a9   :  { %v174_v16 = vadd.f32 %v275_v14, %v173_v15 }
 0x1ab   :  { %v185_v17 = vmax.f32 %v174_v16, 0.0 }
 0x1ad   :  { %v189_v18 = vmul.f32 %v185_v17, %v185_v17 }
 0x1af   :  { %193 = vadd.xlane.f32.xlu0 %v189_v18 }
 0x1b0   :  { %v176_v19 = vpop.f32.mrf.mxu2 }
 0x1b1   :  { %v177_v20 = vadd.f32 %v275_v14, %v176_v19 }
 0x1b3   :  { %v186_v21 = vmax.f32 %v177_v20, 0.0 }
 0x1b5   :  { %v190_v22 = vmul.f32 %v186_v21, %v186_v21 }
 0x1b7   :  { %195 = vadd.xlane.f32.xlu0 %v190_v22 }
 0x1b8   :  { %v179_v23 = vpop.f32.mrf.mxu2 }
 0x1b9   :  { %v180_v24 = vadd.f32 %v275_v14, %v179_v23 }
 0x1bb   :  { %v187_v25 = vmax.f32 %v180_v24, 0.0 }
 0x1bd   :  { %v191_v26 = vmul.f32 %v187_v25, %v187_v25 }
 0x1bf   :  { %197 = vadd.xlane.f32.xlu1 %v191_v26 }
 0x1c0   :  { %v182_v27 = vpop.f32.mrf.mxu2 }
 0x1c1   :  { %v183_v28 = vadd.f32 %v275_v14, %v182_v27 }
 0x1c3   :  { %v489_v29 = vmax.f32 %v183_v28, 0.0 }
 0x1c5   :  { %v192_v30 = vmul.f32 %v489_v29, %v489_v29 }
 0x1c7   :  { %199 = vadd.xlane.f32.xlu1 %v192_v30 }
 0x222   :  { %v194_v31 = vpop.xlane.xlu0 %193 }
 0x223   :  { %v201_v32 = vmax.f32 %v194_v31, 1e-24 }
 0x225   :  { %276 = vrsqrt.f32 %v201_v32  ;;  %vm211_vm1 = vweird.f32 %v201_v32 }
 0x22a   :  { %v196_v33 = vpop.xlane.xlu0 %195 }
 0x22b   :  { %v277_v34 = vpop.eup %276  ;;  %v202_v35 = vmax.f32 %v196_v33, 1e-24 }
 0x22c   :  { %v206_v36 = vmul.f32 %v277_v34, %v201_v32  ;;  %vm212_vm0 = vweird.f32 %v277_v34 }
 0x22d   :  { %278 = vrsqrt.f32 %v202_v35  ;;  %vm213_vm2 = vmor %vm211_vm1, %vm212_vm0  ;;  %vm221_vm4 = vweird.f32 %v202_v35 }
 0x22e   :  { %v207_v37 = vmul.f32 %v277_v34, %v206_v36 }
 0x230   :  { %v208_v38 = vmul.f32 0.5, %v207_v37 }
 0x232   :  { %v209_v39 = vsub.f32 1.5, %v208_v38  ;;  %v198_v40 = vpop.xlane.xlu1 %197 }
 0x233   :  { %v279_v41 = vpop.eup %278  ;;  %v203_v42 = vmax.f32 %v198_v40, 1e-24 }
 0x234   :  { %v210_v43 = vmul.f32 %v277_v34, %v209_v39  ;;  %v216_v44 = vmul.f32 %v279_v41, %v202_v35  ;;  %vm222_vm3 = vweird.f32 %v279_v41 }
 0x235   :  { %280 = vrsqrt.f32 %v203_v42  ;;  %vm223_vm5 = vmor %vm221_vm4, %vm222_vm3  ;;  %vm231_vm7 = vweird.f32 %v203_v42 }
 0x236   :  { %v214_v45 = vsel %vm213_vm2, %v277_v34, %v210_v43  ;;  %v217_v46 = vmul.f32 %v279_v41, %v216_v44 }
 0x237   :  { %v245_v47 = vmul.f32 %v214_v45, %v185_v17 }
 0x238   :  { %v218_v48 = vmul.f32 0.5, %v217_v46 }
 0x239   :  { %249 = vst [vmem:[%s513_s7] sm:$0xff] %v245_v47 }
 0x23a   :  { %v219_v49 = vsub.f32 1.5, %v218_v48  ;;  %v200_v50 = vpop.xlane.xlu1 %199 }
 0x23b   :  { %v281_v51 = vpop.eup %280  ;;  %v204_v52 = vmax.f32 %v200_v50, 1e-24 }
 0x23c   :  { %v220_v53 = vmul.f32 %v279_v41, %v219_v49  ;;  %v226_v54 = vmul.f32 %v281_v51, %v203_v42  ;;  %vm232_vm6 = vweird.f32 %v281_v51 }
 0x23d   :  { %282 = vrsqrt.f32 %v204_v52  ;;  %vm233_vm8 = vmor %vm231_vm7, %vm232_vm6  ;;  %vm241_vm10 = vweird.f32 %v204_v52 }
 0x23e   :  { %v224_v55 = vsel %vm223_vm5, %v279_v41, %v220_v53  ;;  %v227_v56 = vmul.f32 %v281_v51, %v226_v54 }
 0x23f   :  { %v246_v57 = vmul.f32 %v224_v55, %v186_v21 }
 0x240   :  { %v228_v58 = vmul.f32 0.5, %v227_v56 }
 0x241   :  { %250 = vst [vmem:[%s513_s7 + $0x8] sm:$0xff] %v246_v57 }
 0x242   :  { %v229_v59 = vsub.f32 1.5, %v228_v58 }
 0x243   :  { %v283_v60 = vpop.eup %282 }
 0x244   :  { %v230_v61 = vmul.f32 %v281_v51, %v229_v59  ;;  %v236_v62 = vmul.f32 %v283_v60, %v204_v52  ;;  %vm242_vm9 = vweird.f32 %v283_v60 }
 0x245   :  { %vm243_vm11 = vmor %vm241_vm10, %vm242_vm9 }
 0x246   :  { %v234_v63 = vsel %vm233_vm8, %v281_v51, %v230_v61  ;;  %v237_v0 = vmul.f32 %v283_v60, %v236_v62 }
 0x247   :  { %v247_v1 = vmul.f32 %v234_v63, %v187_v25 }
 0x248   :  { %v238_v2 = vmul.f32 0.5, %v237_v0 }
 0x249   :  { %251 = vst [vmem:[%s513_s7 + $0x10] sm:$0xff] %v247_v1 }
 0x24a   :  { %v239_v3 = vsub.f32 1.5, %v238_v2 }
 0x24c   :  { %v240_v4 = vmul.f32 %v283_v60, %v239_v3 }
 0x24e   :  { %v244_v5 = vsel %vm243_vm11, %v283_v60, %v240_v4 }
 0x24f   :  { %v248_v6 = vmul.f32 %v244_v5, %v489_v29 }
 0x251   :  { %252 = vst [vmem:[%s513_s7 + $0x18] sm:$0xff] %v248_v6 }

</bundles_post_ra>
